<compile_context>
chip_gen: v7x
topology: tpu7x:2x2x1
jax: 0.10.0
libtpu: 0.0.40
codegen_flags: <defaults>
</compile_context>

<pallas_src>
import functools

import jax
import jax.numpy as jnp
from jax import lax
from jax.experimental import pallas as pl
from jax.experimental.pallas import tpu as pltpu


def _mlp_kernel(xT_ref, w1_ref, b1_ref, w2_ref, b2_ref, w3_ref, b3_ref, o_ref,
                *, sub, n_inner):
    # xT_ref: (4, TB) bf16   w*: (out, in) bf16   b*: (out, 1) f32   o_ref: (1, TB) f32
    # Hoist weight / bias loads out of the (unrolled) inner loop.
    w1 = w1_ref[...]
    w2 = w2_ref[...]
    w3 = w3_ref[...]
    b1 = b1_ref[...]
    b2 = b2_ref[...]
    b3 = b3_ref[...]

    def body(t, carry):
        off = pl.multiple_of(t * sub, 128)
        xt = xT_ref[:, pl.ds(off, sub)]                                    # (4, sub) bf16
        h1 = jnp.dot(w1, xt, preferred_element_type=jnp.float32)           # (64, sub) f32 acc
        h1 = jnp.maximum(h1 + b1, 0.0).astype(jnp.bfloat16)                # fused ReLU + cast
        h2 = jnp.dot(w2, h1, preferred_element_type=jnp.float32)           # (32, sub)
        h2 = jnp.maximum(h2 + b2, 0.0).astype(jnp.bfloat16)
        out = jnp.dot(w3, h2, preferred_element_type=jnp.float32)          # (1, sub)
        o_ref[:, pl.ds(off, sub)] = (out + b3).astype(o_ref.dtype)         # lane-dense store
        return carry

    lax.fori_loop(0, n_inner, body, 0, unroll=True)


def _round_up(n, m):
    return ((n + m - 1) // m) * m


def _cdiv(a, b):
    return -(-a // b)


def _choose_tiles(batch, block_batch):
    """Pick (tile_batch, padded_batch, n_steps): tb % 128 == 0, bounded pad waste,
    and >= 2 'parallel' grid steps when the batch allows it (v7x megacore)."""
    batch_128 = _round_up(batch, 128)
    tb = min(_round_up(block_batch, 128), batch_128)
    n_steps = _cdiv(batch_128, tb)
    if n_steps < 2 and batch_128 >= 256:
        n_steps = 2
    # Re-balance so grid*tb - batch stays < n_steps*128 instead of up to (tb-1) columns.
    tb = _round_up(_cdiv(batch_128, n_steps), 128)
    return tb, tb * n_steps, n_steps


@functools.partial(jax.jit, static_argnames=("block_batch",))
def crime_prediction_forward(x, w1, b1, w2, b2, w3, b3, *, block_batch=4096):
    """x: (batch, in_features) f32; weights in PyTorch (out, in) layout, biases (out,)."""
    batch, in_features = x.shape
    h1_dim, h2_dim, out_dim = w1.shape[0], w2.shape[0], w3.shape[0]

    tb, batch_p, n_steps = _choose_tiles(batch, block_batch)
    grid = (n_steps,)

    # Batch on the lane dim: cast + transpose + (tiny) pad fuse into one XLA pass over x.
    # TODO(synk): a free (batch,4)->(batch/32,128) reshape + in-kernel de-interleave would
    # remove even this pass; skipped here (complexity vs. ~1 extra pass over a 4-wide x).
    xT = x.astype(jnp.bfloat16).T
    if batch_p != batch:
        xT = jnp.pad(xT, ((0, 0), (0, batch_p - batch)))

    w1b = w1.astype(jnp.bfloat16)
    w2b = w2.astype(jnp.bfloat16)
    w3b = w3.astype(jnp.bfloat16)
    b1c = b1.astype(jnp.float32).reshape(h1_dim, 1)
    b2c = b2.astype(jnp.float32).reshape(h2_dim, 1)
    b3c = b3.astype(jnp.float32).reshape(out_dim, 1)

    # Register-resident sub-tile: activations for `sub` columns fit in the vreg file.
    sub = 256 if tb % 256 == 0 else 128
    n_inner = tb // sub

    resident = lambda shape: pl.BlockSpec(shape, lambda i: (0, 0))

    flops = 2 * batch_p * (in_features * h1_dim + h1_dim * h2_dim + h2_dim * out_dim)
    bytes_accessed = (xT.size * 2 + batch_p * out_dim * 4
                      + (w1b.size + w2b.size + w3b.size) * 2
                      + (b1c.size + b2c.size + b3c.size) * 4)

    outT = pl.pallas_call(
        functools.partial(_mlp_kernel, sub=sub, n_inner=n_inner),
        out_shape=jax.ShapeDtypeStruct((out_dim, batch_p), jnp.float32),
        grid=grid,
        in_specs=[
            pl.BlockSpec((in_features, tb), lambda i: (0, i)),   # x tile, pipelined
            resident(w1b.shape),
            resident((h1_dim, 1)),
            resident(w2b.shape),
            resident((h2_dim, 1)),
            resident(w3b.shape),
            resident((out_dim, 1)),
        ],
        out_specs=pl.BlockSpec((out_dim, tb), lambda i: (0, i)),
        compiler_params=pltpu.CompilerParams(
            dimension_semantics=("parallel",),
        ),
        cost_estimate=pl.CostEstimate(
            flops=flops, transcendentals=0, bytes_accessed=bytes_accessed),
    )(xT, w1b, b1c, w2b, b2c, w3b, b3c)

    # (1, batch_p) -> (batch, 1); with no padding this is a free reshape, otherwise a
    # tiny slice of the 4 B/sample output.
    return outT[:, :batch].T


def init_params(key, input_size):
    """Mirror nn.Linear default init: U(-1/sqrt(fan_in), 1/sqrt(fan_in)), PyTorch layout."""
    def linear(k, fan_in, fan_out):
        kw, kb = jax.random.split(k)
        bound = 1.0 / jnp.sqrt(jnp.float32(fan_in))
        w = jax.random.uniform(kw, (fan_out, fan_in), jnp.float32, -bound, bound)
        b = jax.random.uniform(kb, (fan_out,), jnp.float32, -bound, bound)
        return w, b

    k1, k2, k3 = jax.random.split(key, 3)
    w1, b1 = linear(k1, input_size, 64)
    w2, b2 = linear(k2, 64, 32)
    w3, b3 = linear(k3, 32, 1)
    return w1, b1, w2, b2, w3, b3


def reference_forward(x, w1, b1, w2, b2, w3, b3):
    """Pure-JAX reference mirroring the kernel's bf16-operand / f32-accumulate math."""
    def lin(h, w, b):
        return jnp.dot(h.astype(jnp.bfloat16), w.astype(jnp.bfloat16).T,
                       preferred_element_type=jnp.float32) + b
    h1 = jnp.maximum(lin(x, w1, b1), 0.0)
    h2 = jnp.maximum(lin(h1, w2, b2), 0.0)
    return lin(h2, w3, b3)


if __name__ == "__main__":
    # TODO(synk): CSV loading / StandardScaler preprocessing and the Adam/MSE training
    # loop are host-side and out of scope; only CrimePredictionNN.forward is implemented.
    input_size = 4          # features: City, Year, Month, Day (standardized upstream)
    batch = 256

    key = jax.random.PRNGKey(0)
    kx, kp = jax.random.split(key)
    x = jax.random.normal(kx, (batch, input_size), jnp.float32)
    params = init_params(kp, input_size)

    # batch=256 -> tb=128, 2-step "parallel" grid: exercises pipelining + megacore path.
    out = crime_prediction_forward(x, *params)
    out = jax.block_until_ready(out)

    ref = reference_forward(x, *params)
    assert out.shape == (batch, 1), out.shape
    assert jnp.allclose(out, ref, atol=1e-2, rtol=1e-2), "mismatch vs reference"

    print("KERNEL_OK")
</pallas_src>

<mosaic_0001>
module attributes {stable_mosaic.version = 11 : i64} {
  func.func @_mlp_kernel(%arg0: i32, %arg1: memref<4x128xbf16, #tpu.memory_space<vmem>>, %arg2: memref<64x4xbf16, #tpu.memory_space<vmem>>, %arg3: memref<64x1xf32, #tpu.memory_space<vmem>>, %arg4: memref<32x64xbf16, #tpu.memory_space<vmem>>, %arg5: memref<32x1xf32, #tpu.memory_space<vmem>>, %arg6: memref<1x32xbf16, #tpu.memory_space<vmem>>, %arg7: memref<1x1xf32, #tpu.memory_space<vmem>>, %arg8: memref<1x128xf32, #tpu.memory_space<vmem>>) attributes {dimension_semantics = [#tpu.dimension_semantics<parallel>], iteration_bounds = array<i64: 2>, scalar_prefetch = 0 : i64, scratch_operands = 0 : i64, tpu.core_type = #tpu.core_type<tc>, window_params = [{transform_indices = @transform_0, window_bounds = array<i64: 4, 128>}, {pipeline_mode = #tpu.pipeline_mode<synchronous>, transform_indices = @transform_1, window_bounds = array<i64: 64, 4>}, {pipeline_mode = #tpu.pipeline_mode<synchronous>, transform_indices = @transform_2, window_bounds = array<i64: 64, 1>}, {pipeline_mode = #tpu.pipeline_mode<synchronous>, transform_indices = @transform_3, window_bounds = array<i64: 32, 64>}, {pipeline_mode = #tpu.pipeline_mode<synchronous>, transform_indices = @transform_4, window_bounds = array<i64: 32, 1>}, {pipeline_mode = #tpu.pipeline_mode<synchronous>, transform_indices = @transform_5, window_bounds = array<i64: 1, 32>}, {pipeline_mode = #tpu.pipeline_mode<synchronous>, transform_indices = @transform_6, window_bounds = array<i64: 1, 1>}, {transform_indices = @transform_7, window_bounds = array<i64: 1, 128>}]} {
    %c0 = arith.constant 0 : index
    %c0_0 = arith.constant 0 : index
    %0 = vector.load %arg2[%c0, %c0_0] : memref<64x4xbf16, #tpu.memory_space<vmem>>, vector<64x4xbf16>
    %c0_1 = arith.constant 0 : index
    %c0_2 = arith.constant 0 : index
    %1 = vector.load %arg4[%c0_1, %c0_2] : memref<32x64xbf16, #tpu.memory_space<vmem>>, vector<32x64xbf16>
    %c0_3 = arith.constant 0 : index
    %c0_4 = arith.constant 0 : index
    %2 = vector.load %arg6[%c0_3, %c0_4] : memref<1x32xbf16, #tpu.memory_space<vmem>>, vector<1x32xbf16>
    %c0_5 = arith.constant 0 : index
    %c0_6 = arith.constant 0 : index
    %3 = vector.load %arg3[%c0_5, %c0_6] : memref<64x1xf32, #tpu.memory_space<vmem>>, vector<64x1xf32>
    %c0_7 = arith.constant 0 : index
    %c0_8 = arith.constant 0 : index
    %4 = vector.load %arg5[%c0_7, %c0_8] : memref<32x1xf32, #tpu.memory_space<vmem>>, vector<32x1xf32>
    %c0_9 = arith.constant 0 : index
    %c0_10 = arith.constant 0 : index
    %5 = vector.load %arg7[%c0_9, %c0_10] : memref<1x1xf32, #tpu.memory_space<vmem>>, vector<1x1xf32>
    %c0_i32 = arith.constant 0 : i32
    %c128_i32 = arith.constant 128 : i32
    %6 = arith.muli %c0_i32, %c128_i32 : i32
    %7 = tpu.assume_multiple %6, 128 : i32
    %c0_11 = arith.constant 0 : index
    %8 = arith.index_cast %7 : i32 to index
    %9 = vector.load %arg1[%c0_11, %8] : memref<4x128xbf16, #tpu.memory_space<vmem>>, vector<4x128xbf16>
    %cst = arith.constant dense<0.000000e+00> : vector<64x128xf32>
    %10 = tpu.matmul %0, %9, %cst {dimension_numbers = #tpu.dot_dimension_numbers<[1], [0], [0], [1], [0, 0, 1, 1], [], []>} : vector<64x4xbf16>, vector<4x128xbf16>, vector<64x128xf32> -> vector<64x128xf32>
    %11 = vector.broadcast %3 : vector<64x1xf32> to vector<64x128xf32>
    %12 = arith.addf %10, %11 : vector<64x128xf32>
    %cst_12 = arith.constant 0.000000e+00 : f32
    %13 = vector.broadcast %cst_12 : f32 to vector<64x128xf32>
    %14 = arith.maximumf %12, %13 : vector<64x128xf32>
    %15 = arith.truncf %14 : vector<64x128xf32> to vector<64x128xbf16>
    %cst_13 = arith.constant dense<0.000000e+00> : vector<32x128xf32>
    %16 = tpu.matmul %1, %15, %cst_13 {dimension_numbers = #tpu.dot_dimension_numbers<[1], [0], [0], [1], [0, 0, 1, 1], [], []>} : vector<32x64xbf16>, vector<64x128xbf16>, vector<32x128xf32> -> vector<32x128xf32>
    %17 = vector.broadcast %4 : vector<32x1xf32> to vector<32x128xf32>
    %18 = arith.addf %16, %17 : vector<32x128xf32>
    %cst_14 = arith.constant 0.000000e+00 : f32
    %19 = vector.broadcast %cst_14 : f32 to vector<32x128xf32>
    %20 = arith.maximumf %18, %19 : vector<32x128xf32>
    %21 = arith.truncf %20 : vector<32x128xf32> to vector<32x128xbf16>
    %cst_15 = arith.constant dense<0.000000e+00> : vector<1x128xf32>
    %22 = tpu.matmul %2, %21, %cst_15 {dimension_numbers = #tpu.dot_dimension_numbers<[1], [0], [0], [1], [0, 0, 1, 1], [], []>} : vector<1x32xbf16>, vector<32x128xbf16>, vector<1x128xf32> -> vector<1x128xf32>
    %23 = vector.broadcast %5 : vector<1x1xf32> to vector<1x128xf32>
    %24 = arith.addf %22, %23 : vector<1x128xf32>
    %c0_16 = arith.constant 0 : index
    %25 = arith.index_cast %7 : i32 to index
    %26 = vector.load %arg8[%c0_16, %25] : memref<1x128xf32, #tpu.memory_space<vmem>>, vector<1x128xf32>
    tpu.vector_store %arg8[%c0_16, %25], %24 {strides = array<i32>} : memref<1x128xf32, #tpu.memory_space<vmem>>, vector<1x128xf32>,
    %c1_i32 = arith.constant 1 : i32
    return
  }
  func.func @transform_0(%arg0: i32) -> (i32, i32) {
    %c0_i32 = arith.constant 0 : i32
    %c0_i32_0 = arith.constant 0 : i32
    return %c0_i32, %arg0 : i32, i32
  }
  func.func @transform_1(%arg0: i32) -> (i32, i32) {
    %c0_i32 = arith.constant 0 : i32
    %c0_i32_0 = arith.constant 0 : i32
    %c0_i32_1 = arith.constant 0 : i32
    return %c0_i32, %c0_i32_0 : i32, i32
  }
  func.func @transform_2(%arg0: i32) -> (i32, i32) {
    %c0_i32 = arith.constant 0 : i32
    %c0_i32_0 = arith.constant 0 : i32
    %c0_i32_1 = arith.constant 0 : i32
    return %c0_i32, %c0_i32_0 : i32, i32
  }
  func.func @transform_3(%arg0: i32) -> (i32, i32) {
    %c0_i32 = arith.constant 0 : i32
    %c0_i32_0 = arith.constant 0 : i32
    %c0_i32_1 = arith.constant 0 : i32
    return %c0_i32, %c0_i32_0 : i32, i32
  }
  func.func @transform_4(%arg0: i32) -> (i32, i32) {
    %c0_i32 = arith.constant 0 : i32
    %c0_i32_0 = arith.constant 0 : i32
    %c0_i32_1 = arith.constant 0 : i32
    return %c0_i32, %c0_i32_0 : i32, i32
  }
  func.func @transform_5(%arg0: i32) -> (i32, i32) {
    %c0_i32 = arith.constant 0 : i32
    %c0_i32_0 = arith.constant 0 : i32
    %c0_i32_1 = arith.constant 0 : i32
    return %c0_i32, %c0_i32_0 : i32, i32
  }
  func.func @transform_6(%arg0: i32) -> (i32, i32) {
    %c0_i32 = arith.constant 0 : i32
    %c0_i32_0 = arith.constant 0 : i32
    %c0_i32_1 = arith.constant 0 : i32
    return %c0_i32, %c0_i32_0 : i32, i32
  }
  func.func @transform_7(%arg0: i32) -> (i32, i32) {
    %c0_i32 = arith.constant 0 : i32
    %c0_i32_0 = arith.constant 0 : i32
    return %c0_i32, %arg0 : i32, i32
  }
}

</mosaic_0001>

<bundles_post_ra>
// kernel: crime_prediction_forward.1
= control target key start
LH: loop header
LB: loop body
LE: loop exit
PB: predicated region body
PF: predicated region fallthrough
CT: control target
= control target key end

     0   :  { %s1061_s0 = inlined_call_operand.vmem [shape: bf16[4,256], index: 0, kind: input, shape index: {}]   ;;  %s1062_s1 = inlined_call_operand.vmem [shape: bf16[64,4], index: 1, kind: input, shape index: {}]   ;;  %s1063_s2 = inlined_call_operand.vmem [shape: f32[64,1], index: 2, kind: input, shape index: {}]   ;;  %s1064_s3 = inlined_call_operand.vmem [shape: bf16[32,64], index: 3, kind: input, shape index: {}]   ;;  %s1065_s4 = inlined_call_operand.vmem [shape: f32[32,1], index: 4, kind: input, shape index: {}]   ;;  %s1066_s5 = inlined_call_operand.vmem [shape: bf16[1,32], index: 5, kind: input, shape index: {}]   ;;  %s1067_s6 = inlined_call_operand.<no memory space> [shape: f32[1,1], index: 6, kind: input, shape index: {}]   ;;  %s1068_s7 = inlined_call_operand.hbm [shape: f32[1,256], index: 7, kind: output, shape index: {}]  }
   0x1   :  { %v12_v0 = vstv %s1067_s6 }
   0x2   :  { %13 = vst [vmem:[#allocation2] sm:$0x1] %v12_v0 }
   0x3   :  { %14 = vsyncpa [#allocation4], 0 }
   0x4   :  { %16 = vsyncpa [#allocation4 + $0x1], 0  ;;  %s898_s26 = smov 0   ;;  %s900_s27 = smov 0  }
   0x5   :  { %s902_s28 = smov 0   ;;  %s904_s29 = smov 0  }
   0x6 LB: > { %s919_s6 = sadd.s32 4294967295, %s849_s29   ;;  %s671_s30 = sadd.s32 4294967294, %s849_s29   ;;  %s849_s29 = sphi %s904_s29, %s1074_s29   ;;  %s845_s28 = sphi %s902_s28, %s1073_s28   ;;  %s841_s27 = sphi %s900_s27, %s1072_s27   ;;  %s837_s26 = sphi %s898_s26, %s1071_s26  }
   0x7   : > { %s923_s8 = sadd.s32 1, %s849_s29   ;;  %s181_s9 = sadd.s32 1, %s845_s28 }
   0x8   : > { %s178_s10 = ssub.s32 %s849_s29, %s923_s8  ;;  %p191_p0 = scmp.ne.s32.totalorder %s845_s28, %s841_s27 }
   0x9   : > { %p179_p1 = scmp.eq.s32.totalorder %s178_s10, 0  ;;  %p192_p2 = scmp.eq.s32.totalorder %s919_s6, 1 }
   0xa   : > { %p197_p3 = scmp.ne.s32.totalorder %s841_s27, %s837_s26  ;;  %p198_p4 = scmp.eq.s32.totalorder %s671_s30, 1 }
   0xb   : > { %s934_s11 = scalar_select %p179_p1, %s845_s28, %s181_s9  }
   0xc   : > { %p936_p5 = por %p192_p2, %p191_p0  ;;  %p940_p6 = por %p198_p4, %p197_p3 }
   0xd   : > { %p674_p7 = scmp.ge.s32.totalorder %s849_s29, 1  ;;  %p241_p8 = scmp.lt.s32.totalorder %s849_s29, 3 }
   0xf   : > { %p242_p9 = pnand %p674_p7, %p241_p8 }
  0x10   : > { %p271_p10 = scmp.lt.s32.totalorder (!%p242_p9), %s919_s6, 1  ;;  %v781_v1 = vld [vmem:[%s1062_s1] sm:$0xff] (!%p242_p9)   ;;  %vm363_vm0 = vcmask (!%p242_p9), 31744   ;;  %vm376_vm1 = vcmask (!%p242_p9), 1041408   ;;  %v851_v2 = vmov (!%p242_p9), 0   ;;  %v291_v4 = vld [vmem:[%s1063_s2 + $0x10] sm:$0xff] (!%p242_p9) }
  0x11   : > { %245 = sbr.rel (%p242_p9) target bundleno = 726 (0x2d6), region = 48  ;;  %708 = vmatprep.mubr.msk.bf16.mxu0 (!%p242_p9), %vm363_vm0, %v781_v1  ;;  %779 = vset.pattern.permute.xlu0 (!%p242_p9), %v851_v2  ;;  %v289_v3 = vld [vmem:[%s1063_s2] sm:$0xff] (!%p242_p9)  ;;  %v290_v6 = vld [vmem:[%s1063_s2 + $0x8] sm:$0xff] (!%p242_p9)  ;;  %v292_v9 = vld [vmem:[%s1063_s2 + $0x18] sm:$0xff] (!%p242_p9)  ;;  %vm487_vm2 = vcmask (!%p242_p9), 523264   ;;  %v852_v59 = vmov (!%p242_p9), 0.0  }
  0x12   : > { %780 = vset.pattern.permute.xlu1 (!%p242_p9), %v851_v2  ;;  %305 = vperm.xlu0 (!%p242_p9), %779, %v289_v3   ;;  %v782_v8 = vld [vmem:[%s1062_s1 + $0x8] sm:$0xff] (!%p242_p9)   ;;  %v783_v10 = vld [vmem:[%s1062_s1 + $0x10] sm:$0xff] (!%p242_p9)   ;;  %v293_v11 = vld [vmem:[%s1063_s2 + $0x20] sm:$0xff] (!%p242_p9)  ;;  %vm853_vm3 = vmmov (!%p242_p9), 0   ;;  %vm558_vm4 = vcmask (!%p242_p9), 261120   ;;  %s269_s9 = sand.u32 (!%p242_p9), 1, %s841_s27  }
  0x13   : > { %315 = vperm.xlu1 (!%p242_p9), %780, %v291_v4   ;;  %v294_v12 = vld [vmem:[%s1063_s2 + $0x28] sm:$0xff] (!%p242_p9)  ;;  %v295_v13 = vld [vmem:[%s1063_s2 + $0x30] sm:$0xff] (!%p242_p9)  ;;  %v784_v14 = vld [vmem:[%s1062_s1 + $0x18] sm:$0xff] (!%p242_p9)   ;;  %s689_s10 = sshll.u32 (!%p242_p9), %s919_s6, 4  ;;  %s270_s14 = scalar_lea.vmem (!%p242_p9), [#allocation3], %s269_s9 }
  0x14   : > { %v296_v15 = vld [vmem:[%s1063_s2 + $0x38] sm:$0xff] (!%p242_p9)  ;;  %v297_v16 = vld [vmem:[%s1065_s4] sm:$0xff] (!%p242_p9)  ;;  %v298_v17 = vld [vmem:[%s1065_s4 + $0x8] sm:$0xff] (!%p242_p9)  ;;  %s616_s15 = sshll.u32 (!%p242_p9), %s270_s14, 4  ;;  %s1019_s18 = scalar_lea.hbm (!%p242_p9), %s1068_s7, %s689_s10  ;;  %s1021_s15 = int_to_ptr.vmem [resolvable:$true] %s616_s15 }
  0x15   : > { %v299_v18 = vld [vmem:[%s1065_s4 + $0x10] sm:$0xff] (!%p242_p9)  ;;  %v300_v19 = vld [vmem:[%s1065_s4 + $0x18] sm:$0xff] (!%p242_p9)  ;;  %v301_v20 = vld [vmem:[#allocation2] sm:$0x1] (!%p242_p9)  ;;  %s787_s19 = scalar_lea.vmem (!%p242_p9), %s1021_s15, 16  ;;  %s854_s20 = smov (!%p242_p9), [#allocation3]  }
  0x16   : > { %310 = vperm.xlu0 (!%p242_p9), %779, %v290_v6   ;;  %v785_v21 = vld [vmem:[%s1064_s3] sm:$0xff] (!%p242_p9)   ;;  %v786_v58 = vld [vmem:[%s1064_s3 + $0x8] sm:$0xff] (!%p242_p9)   ;;  %p788_p11 = scmp.ne.s32.totalorder (!%p242_p9), %s1021_s15, %s787_s19  ;;  %s791_s21 = sshll.u32 (!%p242_p9), %s854_s20, 4  ;;  %s792_s21 = int_to_ptr.vmem [resolvable:$false] %s791_s21 }
  0x17   : > { %320 = vperm.xlu1 (!%p242_p9), %780, %v292_v9   ;;  %724 = vmatprep.mubr.msk.bf16.mxu1 (!%p242_p9), %vm487_vm2, %v785_v21  ;;  %p794_p0 = scmp.lt.s32.totalorder (!%p242_p9), %s1021_s15, %s792_s21 }
  0x18   : > { %s272_s16 = scalar_select %p271_p10, %s919_s6, 1 }
  0x19   : > { %s604_s6 = scalar_lea.sflag [#allocation4], %s269_s9  ;;  %p789_p12 = pnand %p788_p11, %p936_p5 }
  0x1a   : > { %s675_s17 = sshll.u32 %s272_s16, 1  ;;  %325 = vperm.xlu0 %779, %v293_v11  }
  0x1b   : > { %s274_s22 = scalar_lea.vmem %s1061_s0, %s675_s17  ;;  %330 = vperm.xlu1 %780, %v294_v12   ;;  %p790_p13 = pneg %p789_p12 }
  0x1c   : > { %v302_v5 = vld [vmem:[%s274_s22] sm:$0x3]  ;;  %s793_s22 = scalar_lea.vmem %s792_s21, 32 }
  0x1d   : > { %736 = vmatprep.subr.msk.bf16.mxu0 %vm376_vm1, %v302_v5  ;;  %v378_v7 = vsel %vm376_vm1, %v302_v5, 0  ;;  %p795_p1 = scmp.lt.s32.totalorder %s793_s22, %s787_s19 }
  0x1e   : > { %707 = vmatpush3.bf16.msra.mxu0 %v378_v7  ;;  %335 = vperm.xlu0 %779, %v295_v13  }
  0x1f   : > { %340 = vperm.xlu1 %780, %v296_v15   ;;  %728 = vmatprep.subr.bf16.mxu0 %v852_v59  ;;  %v554_v15 = vlaneseq  ;;  %p796_p2 = por %p795_p1, %p794_p0 }
  0x21   : > { %709 = vmatmul.mubr.msk.bf16.vlgmr.msra.gmra.mrb[0].mxu0 %vm363_vm0, %v782_v8  ;;  %p797_p3 = pnand %p796_p2, %p790_p13 }
  0x22   : > { %712 = vmatprep.mubr.msk.bf16.mxu0 %vm363_vm0, %v783_v10  ;;  %459 = vperm.xlu0 %779, %v297_v16   ;;  %v555_v16 = vshrl.u32 %v554_v15, 7 }
  0x23   : > { %464 = vperm.xlu1 %780, %v298_v17  }
  0x24   : > { %v556_v17 = vsub.s32 0, %v555_v16 }
  0x26   : > { %469 = vperm.xlu0 %779, %v299_v18  }
  0x27   : > { %474 = vperm.xlu1 %780, %v300_v19  }
  0x29   : > { %713 = vmatmul.mubr.msk.bf16.gmra.mrb[4].mxu0 %vm363_vm0, %v784_v14  ;;  %v288_v14 = vld [vmem:[%s1066_s5] sm:$0x1] }
  0x2a   : > { %551 = vperm.xlu0 %779, %v301_v20   ;;  %732 = vmatprep.mubr.msk.bf16.mxu0 %vm853_vm3, %v852_v59 }
  0x91   : > { %v306_v22 = vpop.permute.xlu0 %305 }
  0x92   : > { %v316_v23 = vpop.permute.xlu1 %315 }
  0x95   : > { %v311_v24 = vpop.permute.xlu0 %310 }
  0x96   : > { %v321_v25 = vpop.permute.xlu1 %320 }
  0x99   : > { %v326_v29 = vpop.permute.xlu0 %325 }
  0x9a   : > { %v331_v34 = vpop.permute.xlu1 %330 }
  0x9d   : > { %v336_v41 = vpop.permute.xlu0 %335 }
  0x9e   : > { %v341_v46 = vpop.permute.xlu1 %340 }
  0xa1   : > { %v460_v60 = vpop.permute.xlu0 %459 }
  0xa2   : > { %v465_v61 = vpop.permute.xlu1 %464 }
  0xa5   : > { %v470_v62 = vpop.permute.xlu0 %469 }
  0xa6   : > { %v475_v2 = vpop.permute.xlu1 %474 }
  0xa9   : > { %v552_v18 = vpop.permute.xlu0 %551 }
  0xaa   : > { %v557_v19 = vrot.slane %v552_v18, %v556_v17 }
  0xf4   : > { %v710_v26 = vpop.f32.mrb[0].mxu0 }
  0xf5   : > { %v423_v27 = vadd.f32 %v710_v26, %v316_v23  ;;  %v414_v28 = vpop.f32.mrb[1].mxu0 }
  0xf6   : > { %v415_v30 = vadd.f32 %v414_v28, %v306_v22  ;;  %v711_v31 = vpop.f32.mrb[2].mxu0 }
  0xf7   : > { %v426_v32 = vadd.f32 %v711_v31, %v321_v25  ;;  %v417_v33 = vpop.f32.mrb[3].mxu0  ;;  %v447_v36 = vmax.f32 %v423_v27, 0.0 }
  0xf8   : > { %v418_v35 = vadd.f32 %v417_v33, %v311_v24  ;;  %v445_v38 = vmax.f32 %v415_v30, 0.0 }
  0xf9   : > { %v448_v37 = vmax.f32 %v426_v32, 0.0 }
  0xfa   : > { %v446_v39 = vmax.f32 %v418_v35, 0.0 }
  0xfb   : > { %v454_v40 = vpack.c.bf16 %v448_v37, %v447_v36 }
  0xfc   : > { %v714_v42 = vpop.f32.mrb[4].mxu0  ;;  %v453_v43 = vpack.c.bf16 %v446_v39, %v445_v38 }
  0xfd   : > { %v439_v44 = vadd.f32 %v714_v42, %v336_v41  ;;  %v430_v45 = vpop.f32.mrb[5].mxu0 }
  0xfe   : > { %v431_v47 = vadd.f32 %v430_v45, %v326_v29  ;;  %v715_v48 = vpop.f32.mrb[6].mxu0  ;;  %716 = vmatprep.subr.bf16.mxu1 %v453_v43 }
  0xff   : > { %v442_v49 = vadd.f32 %v715_v48, %v341_v46  ;;  %v433_v50 = vpop.f32.mrb[7].mxu0  ;;  %717 = vmatpush3.bf16.msra.mxu1 %v453_v43  ;;  %v451_v52 = vmax.f32 %v439_v44, 0.0 }
 0x100   : > { %v434_v51 = vadd.f32 %v433_v50, %v331_v34  ;;  %718 = vmatprep.subr.bf16.mxu1 %v454_v40  ;;  %v449_v54 = vmax.f32 %v431_v47, 0.0 }
 0x101   : > { %v452_v53 = vmax.f32 %v442_v49, 0.0 }
 0x102   : > { %v450_v55 = vmax.f32 %v434_v51, 0.0 }
 0x103   : > { %v456_v56 = vpack.c.bf16 %v452_v53, %v451_v52  ;;  %719 = vmatpush3.bf16.msra.mxu1 %v454_v40 }
 0x104   : > { %v455_v57 = vpack.c.bf16 %v450_v55, %v449_v54 }
 0x106   : > { %720 = vmatprep.subr.bf16.mxu1 %v455_v57 }
 0x107   : > { %721 = vmatpush3.bf16.msra.mxu1 %v455_v57 }
 0x108   : > { %722 = vmatprep.subr.bf16.mxu1 %v456_v56 }
 0x10b   : > { %723 = vmatpush3.bf16.msra.mxu1 %v456_v56 }
 0x10e   : > { %725 = vmatmul.mubr.msk.bf16.vlgmr.msra.gmra.mrb[0].mxu1 %vm487_vm2, %v786_v58 }
 0x1e1   : > { %v726_v63 = vpop.f32.mrb[0].mxu1 }
 0x1e2   : > { %v537_v0 = vadd.f32 %v726_v63, %v470_v62  ;;  %v528_v1 = vpop.f32.mrb[1].mxu1 }
 0x1e3   : > { %v529_v3 = vadd.f32 %v528_v1, %v460_v60  ;;  %v727_v4 = vpop.f32.mrb[2].mxu1 }
 0x1e4   : > { %v540_v5 = vadd.f32 %v727_v4, %v475_v2  ;;  %v531_v6 = vpop.f32.mrb[3].mxu1  ;;  %v545_v8 = vmax.f32 %v537_v0, 0.0 }
 0x1e5   : > { %v532_v7 = vadd.f32 %v531_v6, %v465_v61  ;;  %v543_v10 = vmax.f32 %v529_v3, 0.0 }
 0x1e6   : > { %v546_v9 = vmax.f32 %v540_v5, 0.0 }
 0x1e7   : > { %v544_v11 = vmax.f32 %v532_v7, 0.0 }
 0x1e8   : > { %v548_v12 = vpack.c.bf16 %v546_v9, %v545_v8 }
 0x1e9   : > { %v547_v13 = vpack.c.bf16 %v544_v11, %v543_v10 }
 0x1eb   : > { %729 = vmatpush3.bf16.msra.mxu0 %v547_v13 }
 0x1ec   : > { %730 = vmatprep.subr.bf16.mxu0 %v852_v59 }
 0x1ef   : > { %731 = vmatpush3.bf16.msra.mxu0 %v548_v12 }
 0x1f2   : > { %733 = vmatmul.mubr.msk.bf16.vlgmr.msra.gmra.mrb[8].mxu0 %vm558_vm4, %v288_v14 }
 0x2c5   : > { %v596_v20 = vpop.f32.mrb[8].mxu0 }
 0x2c6   : > { %v597_v21 = vadd.f32 %v596_v20, %v557_v19  ;;  %v734_v22 = vpop.f32.mrb[9].mxu0 }
 0x2c7   : > { %v599_v23 = vpop.f32.mrb[10].mxu0 }
 0x2c8   : > { %602 = vst [vmem:[%s270_s14] sm:$0x1] %v597_v21  ;;  %v735_v24 = vpop.f32.mrb[11].mxu0 }
 0x2c9   : > { %800 = shalt.err (!%p797_p3)
}
 0x2ca   : > { %s801_s23 = scalar_lea.hbm %s1019_s18, 16  ;;  %s805_s30 = scalar_lea.hbm %s1068_s7, 32 }
 0x2cb   : > { %p802_p4 = scmp.ne.s32.totalorder %s1019_s18, %s801_s23  ;;  %p806_p9 = scmp.lt.u32.totalorder %s1019_s18, %s1068_s7 }
 0x2cc   : > { %p807_p10 = scmp.lt.u32.totalorder %s805_s30, %s801_s23  ;;  %p809_p12 = scmp.lt.u32.totalorder %s801_s23, %s1019_s18 }
 0x2cd   : > { %p803_p7 = pnand %p802_p4, %p936_p5 }
 0x2ce   : > { %p808_p11 = por %p807_p10, %p806_p9 }
 0x2cf   : > { %p804_p8 = pneg %p803_p7 }
 0x2d0   : > { %p810_p13 = por %p809_p12, %p808_p11 }
 0x2d2   : > { %p811_p0 = pnand %p810_p13, %p804_p8 }
 0x2d4   : > { %814 = shalt.err (!%p811_p0)
}
 0x2d5   : > { %737 = dma.vmem_to_hbm [thread:$0]  (%p936_p5), %s1021_s15, 16, %s1019_s18, %s604_s6  }
 0x2d6 PF: > { %p743_p1 = scmp.ge.s32.totalorder %s849_s29, 2  ;;  %s628_s14 = sand.u32 1, %s837_s26  }
 0x2d7   : > { %s629_s16 = scalar_lea.sflag [#allocation4], %s628_s14 }
 0x2d8   : > { %p740_p2 = pnand %p743_p1, %p940_p6 }
 0x2da   : > { %832 = dma.done.wait (!%p740_p2), %s629_s16, 16  }
 0x2db   : > { %834 = vsyncadd (!%p740_p2), %s629_s16, 4294967280  ;;  %p19_p3 = scmp.ge.s32.totalorder %s923_s8, 4   ;;  %s1071_s26 = smov %s841_s27 }
 0x2dc   : > { %s1072_s27 = smov %s845_s28  ;;  %s1073_s28 = smov %s934_s11 }
 0x2dd   : > { %s1074_s29 = smov %s923_s8  ;;  %21 = sbr.rel (!%p19_p3) target bundleno = 6 (0x6), region = 83 }
 0x2e4   :  { %633 = vsyncpa [#allocation4], 1 }
 0x2e5   :  { %635 = vsyncpa [#allocation4 + $0x1], 1 }

</bundles_post_ra>
